<compile_context>
chip_gen: v5e
topology: v5e:2x2
jax: 0.10.0
libtpu: 0.0.40
codegen_flags: <defaults>
</compile_context>

<pallas_src>
import functools
import math

import jax
import jax.numpy as jnp
from jax import lax
from jax.experimental import pallas as pl
from jax.experimental.pallas import tpu as pltpu


def _xlogx(v):
    # v*log(v) with the 0*log(0) := 0 convention (handles smoothing == 0 or 1).
    return v * math.log(v) if v > 0.0 else 0.0


def _label_smoothing_kernel(x_ref, tgt_ref, s_ref, t_ref, *,
                            n_rows, row_tile, sizep, padding_idx,
                            steps_per_part, chunk, unroll):
    part = pl.program_id(0)      # (optional) megacore split of the row range
    k = pl.program_id(1)         # reduction step within this part

    # Resident accumulators for this part:
    #   s_ref: (8, sizep) column sums of x over valid rows
    #   t_ref: (8, 1)     sums of x[n, target[n]] over valid rows
    @pl.when(k == 0)
    def _init():
        s_ref[...] = jnp.zeros_like(s_ref)
        t_ref[...] = jnp.zeros_like(t_ref)

    # Intended (unclamped) first global row of this tile; overhanging / ghost
    # rows are masked off below via the rows < n_rows check.
    tile_row0 = (part * steps_per_part + k) * row_tile

    col_ids = lax.broadcasted_iota(jnp.int32, (chunk, sizep), 1)
    sub_ids = lax.broadcasted_iota(jnp.int32, (chunk, 1), 0)

    def body(c, carry):
        r0 = pl.multiple_of(c * chunk, chunk)
        x = x_ref[pl.ds(r0, chunk), :].astype(jnp.float32)   # (chunk, sizep)
        tgt = tgt_ref[pl.ds(r0, chunk), :]                    # (chunk, 1) int32

        rows = tile_row0 + r0 + sub_ids                       # (chunk, 1)
        valid = jnp.logical_and(tgt != padding_idx, rows < n_rows)
        xm = jnp.where(valid, x, jnp.float32(0.0))            # 1 select / elem

        # (a) column-wise sums over valid rows: pure VPU vreg adds.
        s_ref[...] += xm.reshape(chunk // 8, 8, sizep).sum(axis=0)

        # (b) x at the target column: one compare + one select per element,
        #     then a cross-lane reduce (XLU slot) to a per-row scalar.
        g = jnp.where(col_ids == tgt, xm, jnp.float32(0.0))
        t_row = jnp.sum(g, axis=1, keepdims=True)             # (chunk, 1)
        t_ref[...] += t_row.reshape(chunk // 8, 8, 1).sum(axis=0)
        return carry

    lax.fori_loop(0, row_tile // chunk, body, 0, unroll=unroll)


def _pick_tiling(n_rows, sizep, x_itemsize, num_parts):
    """Choose (row_tile, chunk, vmem_limit) from the device's VMEM capacity."""
    try:
        vmem_cap = int(pltpu.get_tpu_info().vmem_capacity_bytes)
    except Exception:  # pragma: no cover - conservative fallback (v7x per-core)
        vmem_cap = 64 * 1024 * 1024

    budget = int(0.70 * vmem_cap)

    # Inner-loop row chunk: bounds each f32 elementwise temporary to ~2 MiB.
    chunk = (2 * 1024 * 1024) // max(1, sizep * 4)
    chunk = max(8, min(1024, chunk))
    chunk -= chunk % 8

    rows_per_part = -(-n_rows // num_parts)
    rows_needed = ((rows_per_part + 7) // 8) * 8
    chunk = min(chunk, rows_needed)

    # Working-set model (bytes):
    #   x double buffer:        2 * row_tile * sizep * itemsize
    #   target double buffer:   2 * row_tile * 512   ((.,1) int32 lane-padded)
    #   f32 temporaries:        ~4 * chunk * sizep * 4 (upcast/iota/masked/gated)
    #   accumulators + slack:   ~2 MiB
    temps = 4 * chunk * sizep * 4 + (2 << 20)
    per_row = 2 * sizep * x_itemsize + 2 * 512
    max_rows = max(chunk, (budget - temps) // per_row)

    num_chunks = max(1, min(8, max_rows // chunk, -(-rows_needed // chunk)))
    row_tile = chunk * num_chunks

    est = (2 * row_tile * sizep * x_itemsize + 2 * row_tile * 512
           + 4 * chunk * sizep * 4 + 4 * 8 * sizep * 4 + (2 << 20))
    vmem_limit = min(int(0.92 * vmem_cap), max(est + (8 << 20), 32 << 20))
    return row_tile, chunk, int(vmem_limit)


def label_smoothing_loss(x, target, *, size, padding_idx, smoothing,
                         num_parts=1, cast_to_bf16=False):
    """KLDivLoss(reduction='sum')(x, label_smoothed(target)).

    x: (N, size) log-probabilities (f32 or bf16); target: (N,) integer ids.
    Returns a float32 scalar, matching the PyTorch LabelSmoothing forward.
    """
    assert x.shape[1] == size
    n_rows = x.shape[0]
    confidence = 1.0 - smoothing
    smooth_val = smoothing / (size - 2)
    # sum_c t_c*log(t_c) for one valid row, computed once in Python (no kernel log).
    entropy_const = _xlogx(confidence) + (size - 2) * _xlogx(smooth_val)

    # Lane-dense vocab padding (padded columns get zero weight in the epilogue).
    sizep = ((size + 127) // 128) * 128
    x_in = x
    if sizep != size:
        x_in = jnp.pad(x_in, ((0, 0), (0, sizep - size)))
    if cast_to_bf16 and x_in.dtype != jnp.bfloat16:
        x_in = x_in.astype(jnp.bfloat16)   # memory-bound chips: halves HBM bytes
    x_itemsize = jnp.dtype(x_in.dtype).itemsize

    row_tile, chunk, vmem_limit = _pick_tiling(n_rows, sizep, x_itemsize, num_parts)

    total_tiles = pl.cdiv(n_rows, row_tile)
    steps_per_part = pl.cdiv(total_tiles, num_parts)
    last_tile = total_tiles - 1

    def idx_map(part, k):
        # Clamp virtual tiles past the end back to the last real tile (only
        # relevant for num_parts > 1); their rows are masked off in-kernel.
        return (jnp.minimum(part * steps_per_part + k, last_tile), 0)

    tgt2d = target.astype(jnp.int32).reshape(n_rows, 1)

    kernel = functools.partial(
        _label_smoothing_kernel,
        n_rows=n_rows, row_tile=row_tile, sizep=sizep, padding_idx=padding_idx,
        steps_per_part=steps_per_part, chunk=chunk,
        unroll=(row_tile // chunk) <= 8)

    s_parts, t_parts = pl.pallas_call(
        kernel,
        out_shape=(
            jax.ShapeDtypeStruct((num_parts * 8, sizep), jnp.float32),
            jax.ShapeDtypeStruct((num_parts * 8, 1), jnp.float32),
        ),
        grid_spec=pltpu.PrefetchScalarGridSpec(
            num_scalar_prefetch=0,
            grid=(num_parts, steps_per_part),
            in_specs=[
                pl.BlockSpec((row_tile, sizep), idx_map),
                pl.BlockSpec((row_tile, 1), idx_map),
            ],
            out_specs=[
                pl.BlockSpec((8, sizep), lambda part, k: (part, 0)),
                pl.BlockSpec((8, 1), lambda part, k: (part, 0)),
            ],
        ),
        compiler_params=pltpu.CompilerParams(
            dimension_semantics=("parallel", "arbitrary"),
            vmem_limit_bytes=vmem_limit),
    )(x_in, tgt2d)

    # Host-side epilogue (tiny): apply the column weights, target-column bonus
    # and the entropy constant via the exact valid-row count.
    base_w = jnp.full((sizep,), smooth_val, dtype=jnp.float32)
    base_w = base_w.at[padding_idx].set(0.0)
    if sizep != size:
        base_w = base_w * (jnp.arange(sizep) < size).astype(jnp.float32)

    count_valid = jnp.sum((target != padding_idx).astype(jnp.float32))
    s_col = jnp.sum(s_parts, axis=0)           # (sizep,)
    t_sum = jnp.sum(t_parts)                   # scalar

    return (entropy_const * count_valid
            - (confidence - smooth_val) * t_sum
            - jnp.sum(s_col * base_w))


def _reference_loss(x, target, *, size, padding_idx, smoothing):
    """Pure-JAX reference mirroring the PyTorch module."""
    confidence = 1.0 - smoothing
    smooth_val = smoothing / (size - 2)
    n = x.shape[0]
    true_dist = jnp.full((n, size), smooth_val, dtype=jnp.float32)
    true_dist = true_dist.at[jnp.arange(n), target].set(confidence)
    true_dist = true_dist.at[:, padding_idx].set(0.0)
    true_dist = jnp.where((target == padding_idx)[:, None], 0.0, true_dist)
    contrib = jnp.where(true_dist > 0,
                        true_dist * (jnp.log(jnp.where(true_dist > 0, true_dist, 1.0))
                                     - x.astype(jnp.float32)),
                        0.0)
    return jnp.sum(contrib)


if __name__ == "__main__":
    # Small, deterministic example: 32 tokens, vocab 128, padding_idx 0, smoothing 0.1.
    key = jax.random.PRNGKey(0)
    kx, kt = jax.random.split(key)

    N, V = 32, 128
    padding_idx = 0
    smoothing = 0.1

    logits = jax.random.normal(kx, (N, V), dtype=jnp.float32)
    x = jax.nn.log_softmax(logits, axis=-1)          # KLDivLoss expects log-probs
    target = jax.random.randint(kt, (N,), 0, V, dtype=jnp.int32)
    # Force a couple of padding targets to exercise the row-masking path.
    target = target.at[3].set(padding_idx).at[10].set(padding_idx)

    loss = label_smoothing_loss(x, target, size=V, padding_idx=padding_idx,
                                smoothing=smoothing)
    loss = jax.block_until_ready(loss)

    ref = _reference_loss(x, target, size=V, padding_idx=padding_idx,
                          smoothing=smoothing)
    ref = jax.block_until_ready(ref)

    assert jnp.allclose(loss, ref, rtol=1e-4, atol=1e-3), (loss, ref)
    print("KERNEL_OK")
</pallas_src>

<mosaic_0001>
module attributes {stable_mosaic.version = 11 : i64} {
  func.func @_label_smoothing_kernel(%arg0: i32, %arg1: i32, %arg2: memref<32x128xf32, #tpu.memory_space<vmem>>, %arg3: memref<32x1xi32, #tpu.memory_space<vmem>>, %arg4: memref<8x128xf32, #tpu.memory_space<vmem>>, %arg5: memref<8x1xf32, #tpu.memory_space<vmem>>) attributes {dimension_semantics = [#tpu.dimension_semantics<parallel>, #tpu.dimension_semantics<arbitrary>], iteration_bounds = array<i64: 1, 1>, scalar_prefetch = 0 : i64, scratch_operands = 0 : i64, tpu.core_type = #tpu.core_type<tc>, window_params = [{transform_indices = @transform_0, window_bounds = array<i64: 32, 128>}, {transform_indices = @transform_1, window_bounds = array<i64: 32, 1>}, {transform_indices = @transform_2, window_bounds = array<i64: 8, 128>}, {transform_indices = @transform_3, window_bounds = array<i64: 8, 1>}]} {
    %c0_i32 = arith.constant 0 : i32
    %0 = arith.cmpi eq, %arg1, %c0_i32 : i32
    %1 = arith.extui %0 : i1 to i32
    %c0_i32_0 = arith.constant 0 : i32
    %2 = arith.cmpi ne, %1, %c0_i32_0 : i32
    scf.if %2 {
      %cst_19 = arith.constant 0.000000e+00 : f32
      %42 = vector.broadcast %cst_19 : f32 to vector<8x128xf32>
      %c0_20 = arith.constant 0 : index
      %c0_21 = arith.constant 0 : index
      %43 = vector.load %arg4[%c0_20, %c0_21] : memref<8x128xf32, #tpu.memory_space<vmem>>, vector<8x128xf32>
      tpu.vector_store %arg4[%c0_20, %c0_21], %42 {strides = array<i32>} : memref<8x128xf32, #tpu.memory_space<vmem>>, vector<8x128xf32>,
      %cst_22 = arith.constant 0.000000e+00 : f32
      %44 = vector.broadcast %cst_22 : f32 to vector<8x1xf32>
      %c0_23 = arith.constant 0 : index
      %c0_24 = arith.constant 0 : index
      %45 = vector.load %arg5[%c0_23, %c0_24] : memref<8x1xf32, #tpu.memory_space<vmem>>, vector<8x1xf32>
      tpu.vector_store %arg5[%c0_23, %c0_24], %44 {strides = array<i32>} : memref<8x1xf32, #tpu.memory_space<vmem>>, vector<8x1xf32>,
    } else {
    }
    %c1_i32 = arith.constant 1 : i32
    %3 = arith.muli %arg0, %c1_i32 : i32
    %4 = arith.addi %3, %arg1 : i32
    %c32_i32 = arith.constant 32 : i32
    %5 = arith.muli %4, %c32_i32 : i32
    %6 = tpu.iota {dimensions = array<i32: 1>} : vector<32x128xi32>
    %7 = tpu.iota {dimensions = array<i32: 0>} : vector<32x1xi32>
    %c0_i32_1 = arith.constant 0 : i32
    %c32_i32_2 = arith.constant 32 : i32
    %8 = arith.muli %c0_i32_1, %c32_i32_2 : i32
    %9 = tpu.assume_multiple %8, 32 : i32
    %10 = arith.index_cast %9 : i32 to index
    %c0 = arith.constant 0 : index
    %11 = vector.load %arg2[%10, %c0] : memref<32x128xf32, #tpu.memory_space<vmem>>, vector<32x128xf32>
    %12 = arith.index_cast %9 : i32 to index
    %c0_3 = arith.constant 0 : index
    %13 = vector.load %arg3[%12, %c0_3] : memref<32x1xi32, #tpu.memory_space<vmem>>, vector<32x1xi32>
    %14 = arith.addi %5, %9 : i32
    %15 = vector.broadcast %14 : i32 to vector<32x1xi32>
    %16 = arith.addi %15, %7 : vector<32x1xi32>
    %c0_i32_4 = arith.constant 0 : i32
    %17 = vector.broadcast %c0_i32_4 : i32 to vector<32x1xi32>
    %18 = arith.cmpi ne, %13, %17 : vector<32x1xi32>
    %c32_i32_5 = arith.constant 32 : i32
    %19 = vector.broadcast %c32_i32_5 : i32 to vector<32x1xi32>
    %20 = arith.cmpi slt, %16, %19 : vector<32x1xi32>
    %21 = arith.andi %18, %20 : vector<32x1xi1>
    %cst = arith.constant 0.000000e+00 : f32
    %22 = vector.shape_cast %21 : vector<32x1xi1> to vector<32x1xi1>
    %23 = vector.broadcast %22 : vector<32x1xi1> to vector<32x128xi1>
    %24 = vector.broadcast %cst : f32 to vector<32x128xf32>
    %25 = arith.select %23, %11, %24 : vector<32x128xi1>, vector<32x128xf32>
    %c0_6 = arith.constant 0 : index
    %c0_7 = arith.constant 0 : index
    %26 = vector.load %arg4[%c0_6, %c0_7] : memref<8x128xf32, #tpu.memory_space<vmem>>, vector<8x128xf32>
    %27 = vector.shape_cast %25 : vector<32x128xf32> to vector<4x8x128xf32>
    %cst_8 = arith.constant dense<0.000000e+00> : vector<8x128xf32>
    %28 = vector.multi_reduction <add>, %27, %cst_8 [0] : vector<4x8x128xf32> to vector<8x128xf32>
    %29 = arith.addf %26, %28 : vector<8x128xf32>
    %c0_9 = arith.constant 0 : index
    %c0_10 = arith.constant 0 : index
    %30 = vector.load %arg4[%c0_9, %c0_10] : memref<8x128xf32, #tpu.memory_space<vmem>>, vector<8x128xf32>
    tpu.vector_store %arg4[%c0_9, %c0_10], %29 {strides = array<i32>} : memref<8x128xf32, #tpu.memory_space<vmem>>, vector<8x128xf32>,
    %31 = vector.broadcast %13 : vector<32x1xi32> to vector<32x128xi32>
    %32 = arith.cmpi eq, %6, %31 : vector<32x128xi32>
    %cst_11 = arith.constant 0.000000e+00 : f32
    %33 = vector.broadcast %cst_11 : f32 to vector<32x128xf32>
    %34 = arith.select %32, %25, %33 : vector<32x128xi1>, vector<32x128xf32>
    %cst_12 = arith.constant dense<0.000000e+00> : vector<32xf32>
    %35 = vector.multi_reduction <add>, %34, %cst_12 [1] : vector<32x128xf32> to vector<32xf32>
    %36 = vector.shape_cast %35 : vector<32xf32> to vector<32x1xf32>
    %c0_13 = arith.constant 0 : index
    %c0_14 = arith.constant 0 : index
    %37 = vector.load %arg5[%c0_13, %c0_14] : memref<8x1xf32, #tpu.memory_space<vmem>>, vector<8x1xf32>
    %38 = vector.shape_cast %36 : vector<32x1xf32> to vector<4x8x1xf32>
    %cst_15 = arith.constant dense<0.000000e+00> : vector<8x1xf32>
    %39 = vector.multi_reduction <add>, %38, %cst_15 [0] : vector<4x8x1xf32> to vector<8x1xf32>
    %40 = arith.addf %37, %39 : vector<8x1xf32>
    %c0_16 = arith.constant 0 : index
    %c0_17 = arith.constant 0 : index
    %41 = vector.load %arg5[%c0_16, %c0_17] : memref<8x1xf32, #tpu.memory_space<vmem>>, vector<8x1xf32>
    tpu.vector_store %arg5[%c0_16, %c0_17], %40 {strides = array<i32>} : memref<8x1xf32, #tpu.memory_space<vmem>>, vector<8x1xf32>,
    %c1_i32_18 = arith.constant 1 : i32
    return
  }
  func.func @transform_0(%arg0: i32, %arg1: i32) -> (i32, i32) {
    %c1_i32 = arith.constant 1 : i32
    %0 = arith.muli %arg0, %c1_i32 : i32
    %1 = arith.addi %0, %arg1 : i32
    %c0_i32 = arith.constant 0 : i32
    %2 = arith.minsi %1, %c0_i32 : i32
    %c0_i32_0 = arith.constant 0 : i32
    %c0_i32_1 = arith.constant 0 : i32
    return %2, %c0_i32_0 : i32, i32
  }
  func.func @transform_1(%arg0: i32, %arg1: i32) -> (i32, i32) {
    %c1_i32 = arith.constant 1 : i32
    %0 = arith.muli %arg0, %c1_i32 : i32
    %1 = arith.addi %0, %arg1 : i32
    %c0_i32 = arith.constant 0 : i32
    %2 = arith.minsi %1, %c0_i32 : i32
    %c0_i32_0 = arith.constant 0 : i32
    %c0_i32_1 = arith.constant 0 : i32
    return %2, %c0_i32_0 : i32, i32
  }
  func.func @transform_2(%arg0: i32, %arg1: i32) -> (i32, i32) {
    %c0_i32 = arith.constant 0 : i32
    %c0_i32_0 = arith.constant 0 : i32
    return %arg0, %c0_i32 : i32, i32
  }
  func.func @transform_3(%arg0: i32, %arg1: i32) -> (i32, i32) {
    %c0_i32 = arith.constant 0 : i32
    %c0_i32_0 = arith.constant 0 : i32
    return %arg0, %c0_i32 : i32, i32
  }
}

</mosaic_0001>

<bundles_post_ra>
// kernel: tpu_custom_call.1
= control target key start
LH: loop header
LB: loop body
LE: loop exit
PB: predicated region body
PF: predicated region fallthrough
CT: control target
= control target key end

     0   :  { %v249_v1 = vmov 0   ;;  %s308_s0 = inlined_call_operand.vmem [shape: f32[32,128], index: 0, kind: input, shape index: {}]   ;;  %s309_s1 = inlined_call_operand.vmem [shape: s32[32,1], index: 1, kind: input, shape index: {}]   ;;  %s310_s2 = inlined_call_operand.hbm [shape: f32[8,128], index: 2, kind: output, shape index: {0}]   ;;  %s311_s3 = inlined_call_operand.vmem [shape: f32[8,1], index: 3, kind: output, shape index: {1}]  }
   0x1   :  { %v98_v0 = vld [vmem:[%s309_s1] sm:$0xff]  ;;  %221 = vset.pattern.permute.xlu1 %v249_v1  ;;  %220 = vset.pattern.permute.xlu0 %v249_v1  ;;  %v100_v2 = vld [vmem:[%s309_s1 + $0x10] sm:$0xff] }
   0x2   :  { %vm108_vm0 = vcmp.ne.s32.totalorder %v98_v0, 0 }
   0x3   :  { %9 = vsyncpa [#allocation3], 0  ;;  %151 = vperm.xlu1 %221, %v98_v0   ;;  %v120_v3 = vsel %vm108_vm0, 1, %v249_v1  ;;  %v99_v4 = vld [vmem:[%s309_s1 + $0x8] sm:$0xff]  ;;  %222 = vset.pattern.permute.xlu2 %v249_v1  ;;  %vm110_vm1 = vcmp.ne.s32.totalorder %v100_v2, 0  ;;  %v101_v7 = vld [vmem:[%s309_s1 + $0x18] sm:$0xff]  ;;  %v87_v10 = vlaneseq }
   0x4   :  { %125 = vperm.xlu0 %220, %v120_v3   ;;  %v122_v5 = vsel %vm110_vm1, 1, %v249_v1  ;;  %vm109_vm2 = vcmp.ne.s32.totalorder %v99_v4, 0  ;;  %vm111_vm3 = vcmp.ne.s32.totalorder %v101_v7, 0  ;;  %v96_v11 = vld [vmem:[%s308_s0 + $0x10] sm:$0xff]  ;;  %v94_v17 = vld [vmem:[%s308_s0] sm:$0xff]  ;;  %v95_v22 = vld [vmem:[%s308_s0 + $0x8] sm:$0xff] }
   0x5   :  { %131 = vperm.xlu2 %222, %v122_v5   ;;  %v121_v6 = vsel %vm109_vm2, 1, %v249_v1  ;;  %v123_v8 = vsel %vm111_vm3, 1, %v249_v1  ;;  %v88_v12 = vand.u32 127, %v87_v10  ;;  %v97_v28 = vld [vmem:[%s308_s0 + $0x18] sm:$0xff]  ;;  %s250_s27 = smov [#allocation2]   ;;  %s192_s4 = sshll.u32 %s310_s2, 4  ;;  %s193_s4 = int_to_ptr.hbm [resolvable:$true] %s192_s4 }
   0x6   :  { %s190_s28 = sshll.u32 %s250_s27, 4  ;;  %vm83_vm12 = vcmask 7168   ;;  %v251_v34 = vmov 0.0   ;;  %s191_s28 = int_to_ptr.vmem [resolvable:$true] %s190_s28 }
   0x7   :  { %84 = vst.msk [vmem:[%s311_s3] sm:$0xff] %vm83_vm12, %v251_v34 }
   0xb   :  { %154 = vperm.xlu1 %221, %v99_v4  }
   0xc   :  { %128 = vperm.xlu0 %220, %v121_v6  }
   0xd   :  { %157 = vperm.xlu2 %222, %v100_v2  }
   0xe   :  { %v178_v41 = vld [vmem:[%s311_s3] sm:$0xff] }
  0x13   :  { %160 = vperm.xlu1 %221, %v101_v7  }
  0x14   :  { %134 = vperm.xlu0 %220, %v123_v8  }
  0x5f   :  { %v132_v9 = vpop.permute.xlu2 %131 }
  0x60   :  { %vm138_vm4 = vcmp.eq.s32.totalorder %v132_v9, 1 }
  0x61   :  { %v142_v13 = vsel %vm138_vm4, %v96_v11, 0.0 }
  0x67   :  { %v158_v14 = vpop.permute.xlu2 %157 }
  0x68   :  { %vm164_vm5 = vcmp.eq.s32.totalorder %v88_v12, %v158_v14 }
  0x69   :  { %v168_v15 = vsel %vm164_vm5, %v142_v13, 0.0 }
  0x6a   :  { %174 = vadd.xlane.f32.xlu1 %v168_v15 }
  0x75   :  { %v152_v16 = vpop.permute.xlu1 %151 }
  0x76   :  { %vm162_vm6 = vcmp.eq.s32.totalorder %v88_v12, %v152_v16  ;;  %v126_v18 = vpop.permute.xlu0 %125 }
  0x77   :  { %vm136_vm7 = vcmp.eq.s32.totalorder %v126_v18, 1 }
  0x78   :  { %v140_v19 = vsel %vm136_vm7, %v94_v17, 0.0 }
  0x79   :  { %v166_v20 = vsel %vm162_vm6, %v140_v19, 0.0 }
  0x7a   :  { %170 = vadd.xlane.f32.xlu2 %v166_v20 }
  0x7d   :  { %v155_v21 = vpop.permute.xlu1 %154 }
  0x7e   :  { %v129_v23 = vpop.permute.xlu0 %128  ;;  %vm163_vm9 = vcmp.eq.s32.totalorder %v88_v12, %v155_v21 }
  0x7f   :  { %vm137_vm8 = vcmp.eq.s32.totalorder %v129_v23, 1 }
  0x80   :  { %v141_v24 = vsel %vm137_vm8, %v95_v22, 0.0 }
  0x81   :  { %v167_v25 = vsel %vm163_vm9, %v141_v24, 0.0  ;;  %v145_v26 = vadd.f32 %v141_v24, %v140_v19 }
  0x82   :  { %172 = vadd.xlane.f32.xlu0 %v167_v25 }
  0x83   :  { %v146_v30 = vadd.f32 %v145_v26, %v142_v13 }
  0x85   :  { %v161_v27 = vpop.permute.xlu1 %160 }
  0x86   :  { %v135_v29 = vpop.permute.xlu0 %134  ;;  %vm165_vm11 = vcmp.eq.s32.totalorder %v88_v12, %v161_v27 }
  0x87   :  { %vm139_vm10 = vcmp.eq.s32.totalorder %v135_v29, 1 }
  0x88   :  { %v143_v31 = vsel %vm139_vm10, %v97_v28, 0.0 }
  0x89   :  { %v147_v32 = vadd.f32 %v146_v30, %v143_v31  ;;  %v169_v33 = vsel %vm165_vm11, %v143_v31, 0.0 }
  0x8a   :  { %176 = vadd.xlane.f32.xlu2 %v169_v33 }
  0x8b   :  { %149 = vst [vmem:[#allocation2] sm:$0xff] %v147_v32 }
  0x8c   :  { %195 = dma.vmem_to_hbm [thread:$0]  %s191_s28, 128, %s193_s4, [#allocation3]  }
  0xdd   :  { %v175_v38 = vpop.xlane.xlu1 %174 }
  0xed   :  { %v171_v35 = vpop.xlane.xlu2 %170 }
  0xf5   :  { %v173_v36 = vpop.xlane.xlu0 %172 }
  0xf6   :  { %v179_v37 = vadd.f32 %v173_v36, %v171_v35 }
  0xf8   :  { %v180_v39 = vadd.f32 %v179_v37, %v175_v38 }
  0xfd   :  { %v177_v40 = vpop.xlane.xlu2 %176 }
  0xfe   :  { %v181_v42 = vadd.f32 %v180_v39, %v177_v40 }
 0x100   :  { %v182_v43 = vadd.f32 %v181_v42, %v178_v41 }
 0x102   :  { %184 = vst.msk [vmem:[%s311_s3] sm:$0xff] %vm83_vm12, %v182_v43 }
 0x103   :  { %247 = dma.done.wait [#allocation3], 128  }
 0x104   :  { %248 = vsyncadd [#allocation3], 4294967168 }
 0x105   :  { %204 = vsyncpa [#allocation3], 1 }

</bundles_post_ra>
